<compile_context>
chip_gen: v7x
topology: tpu7x:2x2x1
jax: 0.10.0
libtpu: 0.0.40
codegen_flags: <defaults>
</compile_context>

<pallas_src>
import functools

import jax
import jax.numpy as jnp
from jax.experimental import pallas as pl
from jax.experimental.pallas import tpu as pltpu


def _ensemble_mlp_fused_kernel(x_ref, w1_ref, b1_ref, w2_ref, b2_ref, o_ref):
    # x_ref:  (B, D_in)        bf16
    # w1_ref: (D_in, N*H)      bf16  -- all members' first-layer weights, fused
    # b1_ref: (1, N*H)         f32
    # w2_ref: (N*H, OUT_PAD)   bf16  -- block-diagonal second-layer weights
    # b2_ref: (1, OUT_PAD)     f32
    # o_ref:  (B, OUT_PAD)     f32   -- lane-dense output slab (member-major cols)
    x = x_ref[...]
    h = jnp.dot(x, w1_ref[...], preferred_element_type=jnp.float32)
    h = jnp.maximum(h + b1_ref[...], 0.0)           # f32 bias + ReLU on the VPU
    h = h.astype(w2_ref.dtype)                      # back to bf16 for the MXU
    y = jnp.dot(h, w2_ref[...], preferred_element_type=jnp.float32)
    o_ref[...] = (y + b2_ref[...]).astype(o_ref.dtype)


def pack_ensemble_params(w1, b1, w2, b2, compute_dtype=jnp.bfloat16):
    """One-time layout plumbing: fuse all members' params into lane-dense slabs.

    w1: (N, D_in, H)   b1: (N, 1, H)
    w2: (N, H, D_out)  b2: (N, 1, D_out)
    Returns ((w1_all, b1_all, w2_block, b2_all), (N, D_out)).
    Call once per parameter update; NOT on the per-forward hot path.
    """
    N, D_in, H = w1.shape
    D_out = w2.shape[-1]
    NH, ND_out = N * H, N * D_out
    # Round fused output width up to a multiple of 128 lanes (unmasked stores).
    OUT_PAD = max(128, ((ND_out + 127) // 128) * 128)

    # First layer fused across members: columns [i*H:(i+1)*H] belong to member i.
    w1_all = jnp.transpose(w1, (1, 0, 2)).reshape(D_in, NH).astype(compute_dtype)
    b1_all = b1.reshape(1, NH).astype(jnp.float32)

    # Second layer as a block-diagonal matrix: rows [i*H:(i+1)*H],
    # cols [i*D_out:(i+1)*D_out] hold member i's W2.  Single einsum, no loop.
    blk = jnp.einsum("ij,iho->ihjo", jnp.eye(N, dtype=w2.dtype), w2)
    blk = blk.reshape(NH, ND_out).astype(compute_dtype)
    w2_block = jnp.zeros((NH, OUT_PAD), compute_dtype).at[:, :ND_out].set(blk)

    b2_all = jnp.zeros((1, OUT_PAD), jnp.float32)
    b2_all = b2_all.at[:, :ND_out].set(b2.reshape(1, ND_out).astype(jnp.float32))

    return (w1_all, b1_all, w2_block, b2_all), (N, D_out)


@functools.partial(jax.jit, static_argnames=("n_ensemble", "d_out"))
def model_ensemble_forward(x, w1_all, b1_all, w2_block, b2_all, *,
                           n_ensemble, d_out):
    """Run every ensemble member on x (single fused, gridless Pallas call).

    x: (B, D_in); packed params from pack_ensemble_params().
    Returns (N, B, D_out) — the stacked list of per-member outputs.
    """
    B, D_in = x.shape
    NH = w1_all.shape[1]
    OUT_PAD = w2_block.shape[1]
    ND_out = n_ensemble * d_out

    x_c = x.astype(w1_all.dtype)   # bf16 for the MXU; f32 accumulation inside

    # ---- advisory cost estimate (tracks actual dtypes) ----
    flops = 2 * B * D_in * NH + 2 * B * NH * OUT_PAD
    bytes_accessed = (
        x_c.size * x_c.dtype.itemsize
        + w1_all.size * w1_all.dtype.itemsize
        + b1_all.size * b1_all.dtype.itemsize
        + w2_block.size * w2_block.dtype.itemsize
        + b2_all.size * b2_all.dtype.itemsize
        + B * OUT_PAD * 4)  # f32 output slab
    cost = pl.CostEstimate(flops=flops, transcendentals=0,
                           bytes_accessed=bytes_accessed)

    # Single invocation, everything VMEM-resident (no grid, no per-step DMA churn).
    vmem_spec = pl.BlockSpec(memory_space=pltpu.MemorySpace.VMEM)
    y_slab = pl.pallas_call(
        _ensemble_mlp_fused_kernel,
        out_shape=jax.ShapeDtypeStruct((B, OUT_PAD), jnp.float32),
        in_specs=[vmem_spec] * 5,
        out_specs=vmem_spec,
        cost_estimate=cost,
    )(x_c, w1_all, b1_all, w2_block, b2_all)

    # Un-pad and restack as the "list of per-member outputs": (N, B, D_out).
    y = y_slab[:, :ND_out].reshape(B, n_ensemble, d_out)
    return jnp.transpose(y, (1, 0, 2))


def _reference_forward(x, w1, b1, w2, b2):
    # Pure-JAX f32 reference: each member applied to the same x, stacked.
    h = jnp.maximum(jnp.einsum("bd,ndh->nbh", x, w1) + b1, 0.0)
    return jnp.einsum("nbh,nho->nbo", h, w2) + b2


if __name__ == "__main__":
    # Small shapes consistent with the module's forward.
    N_ensemble = 5
    B, D_in, H, D_out = 8, 32, 128, 16

    key = jax.random.PRNGKey(0)
    kx, kw1, kb1, kw2, kb2 = jax.random.split(key, 5)

    x = jax.random.normal(kx, (B, D_in), dtype=jnp.float32)
    # Deterministic per-member params (each member independently initialized,
    # mirroring copy.deepcopy of a freshly built model per member).
    w1 = jax.random.normal(kw1, (N_ensemble, D_in, H), dtype=jnp.float32) * 0.1
    b1 = jax.random.normal(kb1, (N_ensemble, 1, H), dtype=jnp.float32) * 0.1
    w2 = jax.random.normal(kw2, (N_ensemble, H, D_out), dtype=jnp.float32) * 0.1
    b2 = jax.random.normal(kb2, (N_ensemble, 1, D_out), dtype=jnp.float32) * 0.1

    # One-time packing (off the per-forward hot path).
    packed, (n_ens, d_out_) = pack_ensemble_params(w1, b1, w2, b2)
    packed = jax.block_until_ready(packed)

    out = model_ensemble_forward(x, *packed, n_ensemble=n_ens, d_out=d_out_)
    out = jax.block_until_ready(out)

    ref = _reference_forward(x, w1, b1, w2, b2)
    assert out.shape == (N_ensemble, B, D_out)
    # bf16 matmuls with f32 accumulation: loosened tolerance vs. f32 reference.
    assert jnp.allclose(out, ref, atol=5e-2, rtol=5e-2), float(
        jnp.max(jnp.abs(out - ref)))

    # TODO(synk): the original forward's multiprocessing.Pool dispatch has no
    # Pallas equivalent; member-level parallelism is expressed by fusing all
    # members into one lane-dense kernel invocation instead.
    print("KERNEL_OK")
</pallas_src>

<mosaic_0001>
module attributes {stable_mosaic.version = 11 : i64} {
  func.func @_ensemble_mlp_fused_kernel(%arg0: memref<8x32xbf16, #tpu.memory_space<vmem>>, %arg1: memref<32x640xbf16, #tpu.memory_space<vmem>>, %arg2: memref<1x640xf32, #tpu.memory_space<vmem>>, %arg3: memref<640x128xbf16, #tpu.memory_space<vmem>>, %arg4: memref<1x128xf32, #tpu.memory_space<vmem>>, %arg5: memref<8x128xf32, #tpu.memory_space<vmem>>) attributes {dimension_semantics = [], scalar_prefetch = 0 : i64, scratch_operands = 0 : i64, tpu.core_type = #tpu.core_type<tc>} {
    %c0 = arith.constant 0 : index
    %c0_0 = arith.constant 0 : index
    %0 = vector.load %arg0[%c0, %c0_0] : memref<8x32xbf16, #tpu.memory_space<vmem>>, vector<8x32xbf16>
    %c0_1 = arith.constant 0 : index
    %c0_2 = arith.constant 0 : index
    %1 = vector.load %arg1[%c0_1, %c0_2] : memref<32x640xbf16, #tpu.memory_space<vmem>>, vector<32x640xbf16>
    %cst = arith.constant dense<0.000000e+00> : vector<8x640xf32>
    %2 = tpu.matmul %0, %1, %cst {dimension_numbers = #tpu.dot_dimension_numbers<[1], [0], [0], [1], [0, 0, 1, 1], [], []>} : vector<8x32xbf16>, vector<32x640xbf16>, vector<8x640xf32> -> vector<8x640xf32>
    %c0_3 = arith.constant 0 : index
    %c0_4 = arith.constant 0 : index
    %3 = vector.load %arg2[%c0_3, %c0_4] : memref<1x640xf32, #tpu.memory_space<vmem>>, vector<1x640xf32>
    %4 = vector.broadcast %3 : vector<1x640xf32> to vector<8x640xf32>
    %5 = arith.addf %2, %4 : vector<8x640xf32>
    %cst_5 = arith.constant 0.000000e+00 : f32
    %6 = vector.broadcast %cst_5 : f32 to vector<8x640xf32>
    %7 = arith.maximumf %5, %6 : vector<8x640xf32>
    %8 = arith.truncf %7 : vector<8x640xf32> to vector<8x640xbf16>
    %c0_6 = arith.constant 0 : index
    %c0_7 = arith.constant 0 : index
    %9 = vector.load %arg3[%c0_6, %c0_7] : memref<640x128xbf16, #tpu.memory_space<vmem>>, vector<640x128xbf16>
    %cst_8 = arith.constant dense<0.000000e+00> : vector<8x128xf32>
    %10 = tpu.matmul %8, %9, %cst_8 {dimension_numbers = #tpu.dot_dimension_numbers<[1], [0], [0], [1], [0, 0, 1, 1], [], []>} : vector<8x640xbf16>, vector<640x128xbf16>, vector<8x128xf32> -> vector<8x128xf32>
    %c0_9 = arith.constant 0 : index
    %c0_10 = arith.constant 0 : index
    %11 = vector.load %arg4[%c0_9, %c0_10] : memref<1x128xf32, #tpu.memory_space<vmem>>, vector<1x128xf32>
    %12 = vector.broadcast %11 : vector<1x128xf32> to vector<8x128xf32>
    %13 = arith.addf %10, %12 : vector<8x128xf32>
    %c0_11 = arith.constant 0 : index
    %c0_12 = arith.constant 0 : index
    %14 = vector.load %arg5[%c0_11, %c0_12] : memref<8x128xf32, #tpu.memory_space<vmem>>, vector<8x128xf32>
    tpu.vector_store %arg5[%c0_11, %c0_12], %13 {strides = array<i32>} : memref<8x128xf32, #tpu.memory_space<vmem>>, vector<8x128xf32>,
    return
  }
}

</mosaic_0001>

<bundles_post_ra>
// kernel: model_ensemble_forward.1
= control target key start
LH: loop header
LB: loop body
LE: loop exit
PB: predicated region body
PF: predicated region fallthrough
CT: control target
= control target key end

     0   :  { %10 = vsyncpa [#allocation3], 0  ;;  %s1072_s0 = inlined_call_operand.vmem [shape: bf16[8,32], index: 0, kind: input, shape index: {}]   ;;  %s1073_s1 = inlined_call_operand.hbm [shape: bf16[32,640], index: 1, kind: input, shape index: {}]   ;;  %s1074_s2 = inlined_call_operand.vmem [shape: f32[1,640], index: 2, kind: input, shape index: {}]   ;;  %s1075_s3 = inlined_call_operand.hbm [shape: bf16[640,128], index: 3, kind: input, shape index: {}]   ;;  %s1076_s4 = inlined_call_operand.vmem [shape: f32[1,128], index: 4, kind: input, shape index: {}]   ;;  %s1077_s5 = inlined_call_operand.vmem [shape: f32[8,128], index: 5, kind: output, shape index: {}]  }
   0x1   :  { %11 = vsyncpa [#allocation5], 0  ;;  %s980_s18 = smov [#allocation2]   ;;  %s932_s22 = scalar_lea.hbm %s1073_s1, 1280 }
   0x2   :  { %s19_s19 = sshll.u32 %s980_s18, 4  ;;  %p933_p0 = scmp.ne.s32.totalorder %s1073_s1, %s932_s22  ;;  %s20_s19 = int_to_ptr.vmem [resolvable:$true] %s19_s19 }
   0x3   :  { %p936_p1 = scmp.lt.u32.totalorder %s932_s22, %s1073_s1 }
   0x5   :  { %p938_p2 = pnand %p936_p1, %p933_p0 }
   0x7   :  { %941 = shalt.err (!%p938_p2)
}
   0x8   :  { %s942_s27 = scalar_lea.vmem %s20_s19, 1280  ;;  %p947_p4 = scmp.lt.s32.totalorder %s20_s19, %s20_s19 }
   0x9   :  { %p943_p3 = scmp.ne.s32.totalorder %s20_s19, %s942_s27  ;;  %p948_p5 = scmp.lt.s32.totalorder %s942_s27, %s942_s27 }
   0xb   :  { %p949_p6 = por %p948_p5, %p947_p4 }
   0xd   :  { %p950_p7 = pnand %p949_p6, %p943_p3 }
   0xf   :  { %953 = shalt.err (!%p950_p7)
}
  0x10   :  { %s981_s28 = smov 320   ;;  %s982_s29 = smov 20  }
  0x11   :  { %25 = dma.hbm_to_vmem [thread:$0]  %s1073_s1, 1280, %s20_s19, [#allocation3], %s981_s28, %s981_s28, %s982_s29  }
  0x12   :  { %s983_s7 = smov [#allocation4]   ;;  %s954_s11 = scalar_lea.hbm %s1075_s3, 5120 }
  0x13   :  { %s33_s8 = sshll.u32 %s983_s7, 4  ;;  %p955_p8 = scmp.ne.s32.totalorder %s1075_s3, %s954_s11  ;;  %s34_s8 = int_to_ptr.vmem [resolvable:$true] %s33_s8 }
  0x14   :  { %p958_p9 = scmp.lt.u32.totalorder %s954_s11, %s1075_s3 }
  0x16   :  { %p960_p10 = pnand %p958_p9, %p955_p8 }
  0x18   :  { %963 = shalt.err (!%p960_p10)
}
  0x19   :  { %s964_s16 = scalar_lea.vmem %s34_s8, 5120  ;;  %p969_p12 = scmp.lt.s32.totalorder %s34_s8, %s34_s8 }
  0x1a   :  { %p965_p11 = scmp.ne.s32.totalorder %s34_s8, %s964_s16  ;;  %p970_p13 = scmp.lt.s32.totalorder %s964_s16, %s964_s16 }
  0x1c   :  { %p971_p0 = por %p970_p13, %p969_p12 }
  0x1e   :  { %p972_p1 = pnand %p971_p0, %p965_p11 }
  0x20   :  { %975 = shalt.err (!%p972_p1)
}
  0x21   :  { %s984_s1 = smov 64   ;;  %s985_s17 = smov 4  }
  0x22   :  { %39 = dma.hbm_to_vmem [thread:$0]  %s1075_s3, 5120, %s34_s8, [#allocation5], %s984_s1, %s984_s1, %s985_s17  }
  0x23   :  { %976 = dma.done.wait [#allocation3], 1280  }
  0x24   :  { %977 = vsyncadd [#allocation3], 4294966016 }
  0x25   :  { %978 = dma.done.wait [#allocation5], 5120  }
  0x26   :  { %979 = vsyncadd [#allocation5], 4294962176  ;;  %v986_v0 = vmov 0   ;;  %v878_v1 = vld [vmem:[#allocation2 + $0x4] ss:$20 sps:$4 sm:$0xff]   ;;  %vm141_vm0 = vcmask 261120   ;;  %v64_v45 = vlaneseq }
  0x27   :  { %177 = vmatprep.mubr.bf16.mxu0 %v986_v0  ;;  %v880_v2 = vld [vmem:[#allocation2] ss:$20 sps:$4 sm:$0xff]   ;;  %145 = vmatprep.subr.bf16.mxu0 %v878_v1  ;;  %v883_v4 = vld [vmem:[#allocation2 + $0x28] ss:$20 sps:$4 sm:$0xff]   ;;  %v887_v12 = vld [vmem:[#allocation2 + $0x30] ss:$20 sps:$4 sm:$0xff]  }
  0x28   :  { %v881_v3 = vld [vmem:[#allocation2 + $0x2c] ss:$20 sps:$4 sm:$0xff]   ;;  %146 = vmatpush1.bf16.msra.mxu0 %v880_v2  ;;  %v884_v7 = vld [vmem:[#allocation2 + $0x8] ss:$20 sps:$4 sm:$0xff]   ;;  %v892_v9 = vld [vmem:[#allocation4 + $0x40] sm:$0xff]   ;;  %v987_v16 = vmov 0.0  }
  0x29   :  { %147 = vmatprep.subr.bf16.mxu0 %v881_v3  ;;  %v886_v5 = vld [vmem:[#allocation2 + $0xc] ss:$20 sps:$4 sm:$0xff]   ;;  %v889_v8 = vld [vmem:[#allocation2 + $0x34] ss:$20 sps:$4 sm:$0xff]   ;;  %788 = vmatprep.subr.bf16.mxu1 %v892_v9  ;;  %v894_v11 = vld [vmem:[#allocation4 + $0x48] sm:$0xff]   ;;  %vm988_vm1 = vmmov 0  }
  0x2a   :  { %v49_v6 = vld [vmem:[%s1072_s0] sm:$0xf]  ;;  %v893_v10 = vld [vmem:[#allocation4] sm:$0xff]   ;;  %v895_v13 = vld [vmem:[#allocation4 + $0x8] sm:$0xff]   ;;  %v65_v46 = vshrl.u32 %v64_v45, 7 }
  0x2b   :  { %789 = vmatpush3.bf16.msra.mxu1 %v893_v10  ;;  %v896_v14 = vld [vmem:[#allocation4 + $0x50] sm:$0xff]   ;;  %v900_v18 = vld [vmem:[#allocation4 + $0x58] sm:$0xff]   ;;  %v898_v20 = vld [vmem:[#allocation4 + $0xc0] sm:$0xff]  }
  0x2c   :  { %148 = vmatpush1.bf16.msra.mxu0 %v883_v4  ;;  %790 = vmatprep.subr.bf16.mxu1 %v894_v11  ;;  %v890_v15 = vld [vmem:[#allocation2 + $0x10] ss:$20 sps:$4 sm:$0xff]   ;;  %v891_v19 = vld [vmem:[#allocation2 + $0x38] ss:$20 sps:$4 sm:$0xff]   ;;  %v66_v47 = vsub.s32 0, %v65_v46  ;;  %v70_v49 = vsub.s32 1, %v65_v46 }
  0x2d   :  { %186 = vmatprep.subr.bf16.mxu0 %v886_v5  ;;  %v897_v17 = vld [vmem:[#allocation4 + $0x10] sm:$0xff]   ;;  %v901_v21 = vld [vmem:[#allocation4 + $0x18] sm:$0xff]   ;;  %v904_v22 = vld [vmem:[#allocation4 + $0x60] sm:$0xff]   ;;  %v74_v55 = vsub.s32 2, %v65_v46  ;;  %v78_v58 = vsub.s32 3, %v65_v46 }
  0x2e   :  { %v899_v23 = vld [vmem:[#allocation4 + $0x80] sm:$0xff]   ;;  %v902_v24 = vld [vmem:[#allocation4 + $0xc8] sm:$0xff]   ;;  %v906_v28 = vld [vmem:[#allocation4 + $0xd0] sm:$0xff]  }
  0x2f   :  { %741 = vmatmul.mubr.msk.bf16.vlgmr.msra.gmra.mrb[0].mxu0 %vm141_vm0, %v49_v6  ;;  %791 = vmatpush3.bf16.msra.mxu1 %v895_v13  ;;  %v905_v25 = vld [vmem:[#allocation4 + $0x20] sm:$0xff]   ;;  %v908_v26 = vld [vmem:[#allocation4 + $0x68] sm:$0xff]   ;;  %v907_v30 = vld [vmem:[#allocation4 + $0x90] sm:$0xff]  }
  0x30   :  { %187 = vmatpush1.bf16.msra.mxu0 %v884_v7  ;;  %218 = vmatprep.mubr.bf16.mxu0 %v986_v0  ;;  %v903_v27 = vld [vmem:[#allocation4 + $0x88] sm:$0xff]   ;;  %v910_v31 = vld [vmem:[#allocation4 + $0xd8] sm:$0xff]   ;;  %v912_v33 = vld [vmem:[#allocation4 + $0x70] sm:$0xff]  }
  0x31   :  { %188 = vmatprep.subr.bf16.mxu0 %v889_v8  ;;  %792 = vmatprep.subr.bf16.mxu1 %v896_v14  ;;  %v909_v29 = vld [vmem:[#allocation4 + $0x28] sm:$0xff]   ;;  %v911_v32 = vld [vmem:[#allocation4 + $0x98] sm:$0xff]   ;;  %v913_v34 = vld [vmem:[#allocation4 + $0x30] sm:$0xff]  }
  0x32   :  { %v914_v35 = vld [vmem:[#allocation4 + $0xe0] sm:$0xff]   ;;  %v916_v37 = vld [vmem:[#allocation4 + $0x78] sm:$0xff]   ;;  %v918_v39 = vld [vmem:[#allocation4 + $0xe8] sm:$0xff]  }
  0x33   :  { %793 = vmatpush3.bf16.msra.mxu1 %v897_v17  ;;  %v915_v36 = vld [vmem:[#allocation4 + $0xa0] sm:$0xff]   ;;  %v917_v38 = vld [vmem:[#allocation4 + $0x38] sm:$0xff]   ;;  %v919_v40 = vld [vmem:[#allocation4 + $0xa8] sm:$0xff]  }
  0x34   :  { %189 = vmatpush1.bf16.msra.mxu0 %v887_v12  ;;  %794 = vmatprep.subr.bf16.mxu1 %v900_v18  ;;  %v920_v41 = vld [vmem:[#allocation4 + $0xf0] sm:$0xff]   ;;  %v923_v43 = vld [vmem:[#allocation4 + $0xf8] sm:$0xff]   ;;  %v921_v1 = vld [vmem:[#allocation4 + $0x100] sm:$0xff]  }
  0x35   :  { %841 = vmatprep.subr.bf16.mxu0 %v987_v16  ;;  %v922_v42 = vld [vmem:[#allocation4 + $0xb0] sm:$0xff]   ;;  %v925_v44 = vld [vmem:[#allocation4 + $0xb8] sm:$0xff]   ;;  %v924_v7 = vld [vmem:[#allocation4 + $0x108] sm:$0xff]  }
  0x36   :  { %v62_v48 = vld [vmem:[%s1074_s2] sm:$0x1f]  ;;  %v927_v18 = vld [vmem:[#allocation4 + $0x118] sm:$0xff]  }
  0x37   :  { %742 = vmatmul.mubr.msk.bf16.vlgmr.msra.gmra.mrb[4].mxu0 %vm141_vm0, %v49_v6  ;;  %795 = vmatpush3.bf16.msra.mxu1 %v901_v21  ;;  %v67_v50 = vrot.slane %v62_v48, %v66_v47  ;;  %v71_v51 = vrot.slane %v62_v48, %v70_v49  ;;  %v75_v62 = vrot.slane %v62_v48, %v74_v55  ;;  %v926_v14 = vld [vmem:[#allocation4 + $0x110] sm:$0xff]   ;;  %v82_v21 = vsub.s32 4, %v65_v46 }
  0x38   :  { %842 = vmatpush3.bf16.msra.mxu0 %v890_v15  ;;  %845 = vmatprep.mubr.msk.bf16.mxu0 %vm988_vm1, %v987_v16  ;;  %v79_v0 = vrot.slane %v62_v48, %v78_v58 }
  0x39   :  { %843 = vmatprep.subr.bf16.mxu0 %v987_v16  ;;  %796 = vmatprep.subr.bf16.mxu1 %v904_v22  ;;  %v928_v22 = vld [vmem:[#allocation4 + $0x120] sm:$0xff]  }
  0x3b   :  { %797 = vmatpush3.bf16.msra.mxu1 %v905_v25 }
  0x3c   :  { %844 = vmatpush3.bf16.msra.mxu0 %v891_v19  ;;  %798 = vmatprep.subr.bf16.mxu1 %v908_v26  ;;  %v930_v26 = vld [vmem:[#allocation4 + $0x130] sm:$0xff]  }
  0x3d   :  { %810 = vmatprep.subr.bf16.mxu0 %v898_v20 }
  0x3f   :  { %846 = vmatmul.mubr.msk.bf16.vlgmr.msra.gmra.mrb[8].mxu0 %vm141_vm0, %v49_v6  ;;  %799 = vmatpush3.bf16.msra.mxu1 %v909_v29 }
  0x40   :  { %811 = vmatpush3.bf16.msra.mxu0 %v899_v23  ;;  %800 = vmatprep.subr.bf16.mxu1 %v912_v33  ;;  %v83_v23 = vrot.slane %v62_v48, %v82_v21 }
  0x41   :  { %812 = vmatprep.subr.bf16.mxu0 %v902_v24  ;;  %v929_v24 = vld [vmem:[#allocation4 + $0x128] sm:$0xff]  }
  0x43   :  { %801 = vmatpush3.bf16.msra.mxu1 %v913_v34 }
  0x44   :  { %813 = vmatpush3.bf16.msra.mxu0 %v903_v27  ;;  %802 = vmatprep.subr.bf16.mxu1 %v916_v37 }
  0x45   :  { %814 = vmatprep.subr.bf16.mxu0 %v906_v28  ;;  %v931_v28 = vld [vmem:[#allocation4 + $0x138] sm:$0xff]  }
  0x47   :  { %803 = vmatpush3.bf16.msra.mxu1 %v917_v38 }
  0x48   :  { %815 = vmatpush3.bf16.msra.mxu0 %v907_v30  ;;  %849 = vmatprep.subr.bf16.mxu1 %v987_v16 }
  0x49   :  { %816 = vmatprep.subr.bf16.mxu0 %v910_v31 }
  0x4c   :  { %817 = vmatpush3.bf16.msra.mxu0 %v911_v32 }
  0x4d   :  { %818 = vmatprep.subr.bf16.mxu0 %v914_v35  ;;  %v744_v35 = vld [vmem:[%s1076_s4] ss:$0 sm:$0xff] }
  0x50   :  { %819 = vmatpush3.bf16.msra.mxu0 %v915_v36 }
  0x51   :  { %820 = vmatprep.subr.bf16.mxu0 %v918_v39 }
  0x54   :  { %821 = vmatpush3.bf16.msra.mxu0 %v919_v40 }
  0x55   :  { %822 = vmatprep.subr.bf16.mxu0 %v920_v41 }
  0x58   :  { %823 = vmatpush3.bf16.msra.mxu0 %v922_v42 }
  0x59   :  { %824 = vmatprep.subr.bf16.mxu0 %v923_v43 }
  0x5c   :  { %825 = vmatpush3.bf16.msra.mxu0 %v925_v44 }
 0x102   :  { %v179_v52 = vpop.f32.mrb[0].mxu0 }
 0x103   :  { %v180_v53 = vadd.f32 %v179_v52, %v67_v50  ;;  %v181_v54 = vpop.f32.mrb[1].mxu0 }
 0x104   :  { %v182_v56 = vadd.f32 %v181_v54, %v71_v51  ;;  %v183_v57 = vpop.f32.mrb[2].mxu0 }
 0x105   :  { %v267_v59 = vmax.f32 %v180_v53, 0.0  ;;  %v184_v60 = vpop.f32.mrb[3].mxu0 }
 0x106   :  { %v268_v61 = vmax.f32 %v182_v56, 0.0 }
 0x107   :  { %v272_v2 = vpack.c.bf16 %v267_v59, %v267_v59 }
 0x108   :  { %v273_v63 = vpack.c.bf16 %v268_v61, %v268_v61 }
 0x10a   :  { %v220_v3 = vpop.f32.mrb[4].mxu0  ;;  %636 = vmatprep.mubr.bf16.mxu1 %v273_v63 }
 0x10b   :  { %v221_v4 = vadd.f32 %v220_v3, %v75_v62  ;;  %v222_v5 = vpop.f32.mrb[5].mxu0  ;;  %637 = vmatmul.mubr.bf16.vlgmr.msra.gmra.mrb[0].mxu1 %v272_v2 }
 0x10c   :  { %v223_v6 = vadd.f32 %v222_v5, %v79_v0  ;;  %850 = vmatpush3.bf16.msra.mxu1 %v921_v1  ;;  %v224_v8 = vpop.f32.mrb[6].mxu0  ;;  %865 = vmatprep.mubr.msk.bf16.mxu1 %vm988_vm1, %v987_v16 }
 0x10d   :  { %v269_v9 = vmax.f32 %v221_v4, 0.0  ;;  %851 = vmatprep.subr.bf16.mxu1 %v987_v16  ;;  %v225_v10 = vpop.f32.mrb[7].mxu0 }
 0x10e   :  { %v270_v11 = vmax.f32 %v223_v6, 0.0 }
 0x10f   :  { %v274_v12 = vpack.c.bf16 %v269_v9, %v269_v9 }
 0x110   :  { %v275_v13 = vpack.c.bf16 %v270_v11, %v270_v11  ;;  %852 = vmatpush3.bf16.msra.mxu1 %v924_v7 }
 0x111   :  { %853 = vmatprep.subr.bf16.mxu1 %v987_v16 }
 0x112   :  { %676 = vmatprep.mubr.bf16.mxu0 %v275_v13  ;;  %v261_v15 = vpop.f32.mrb[8].mxu0 }
 0x113   :  { %677 = vmatmul.mubr.bf16.vlgmr.msra.gmra.mrb[12].mxu0 %v274_v12  ;;  %v847_v17 = vpop.f32.mrb[9].mxu0  ;;  %v262_v25 = vadd.f32 %v261_v15, %v83_v23 }
 0x114   :  { %854 = vmatpush3.bf16.msra.mxu1 %v926_v14  ;;  %v264_v19 = vpop.f32.mrb[10].mxu0 }
 0x115   :  { %855 = vmatprep.subr.bf16.mxu1 %v987_v16  ;;  %v848_v20 = vpop.f32.mrb[11].mxu0  ;;  %v271_v27 = vmax.f32 %v262_v25, 0.0 }
 0x117   :  { %v276_v29 = vpack.c.bf16 %v271_v27, %v271_v27 }
 0x118   :  { %856 = vmatpush3.bf16.msra.mxu1 %v927_v18 }
 0x119   :  { %857 = vmatprep.subr.bf16.mxu1 %v987_v16 }
 0x11c   :  { %858 = vmatpush3.bf16.msra.mxu1 %v928_v22 }
 0x11d   :  { %859 = vmatprep.subr.bf16.mxu1 %v987_v16 }
 0x120   :  { %860 = vmatpush3.bf16.msra.mxu1 %v929_v24 }
 0x121   :  { %861 = vmatprep.subr.bf16.mxu1 %v987_v16 }
 0x124   :  { %862 = vmatpush3.bf16.msra.mxu1 %v930_v26 }
 0x125   :  { %863 = vmatprep.subr.bf16.mxu1 %v987_v16 }
 0x128   :  { %864 = vmatpush3.bf16.msra.mxu1 %v931_v28 }
 0x12b   :  { %866 = vmatmul.mubr.bf16.vlgmr.msra.gmra.mrb[4].mxu1 %v276_v29 }
 0x1de   :  { %v804_v30 = vpop.f32.mrb[0].mxu1 }
 0x1df   :  { %v805_v31 = vpop.f32.mrb[1].mxu1 }
 0x1e0   :  { %v806_v32 = vadd.f32 %v805_v31, %v804_v30  ;;  %v807_v33 = vpop.f32.mrb[2].mxu1 }
 0x1e1   :  { %v808_v34 = vpop.f32.mrb[3].mxu1 }
 0x1e2   :  { %v639_v38 = vadd.f32 %v806_v32, %v744_v35 }
 0x1e6   :  { %v826_v36 = vpop.f32.mrb[12].mxu0 }
 0x1e7   :  { %v827_v37 = vpop.f32.mrb[13].mxu0 }
 0x1e8   :  { %v828_v39 = vadd.f32 %v827_v37, %v826_v36  ;;  %v829_v40 = vpop.f32.mrb[14].mxu0 }
 0x1e9   :  { %v830_v41 = vpop.f32.mrb[15].mxu0 }
 0x1ea   :  { %v679_v42 = vadd.f32 %v828_v39, %v639_v38 }
 0x1fe   :  { %v718_v16 = vpop.f32.mrb[4].mxu1 }
 0x1ff   :  { %v719_v43 = vadd.f32 %v718_v16, %v679_v42  ;;  %v867_v44 = vpop.f32.mrb[5].mxu1 }
 0x200   :  { %v721_v45 = vpop.f32.mrb[6].mxu1 }
 0x201   :  { %724 = vst [vmem:[%s1077_s5] sm:$0xff] %v719_v43  ;;  %v868_v46 = vpop.f32.mrb[7].mxu1 }
 0x202   :  { %729 = vsyncpa [#allocation3], 1 }
 0x203   :  { %730 = vsyncpa [#allocation5], 1 }

</bundles_post_ra>
